<compile_context>
chip_gen: v7x
topology: tpu7x:2x2x1
jax: 0.10.0
libtpu: 0.0.40
codegen_flags: <defaults>
</compile_context>

<pallas_src>
import jax
import jax.numpy as jnp
from jax.experimental import pallas as pl
from jax.experimental.pallas import tpu as pltpu


def _round_up(x: int, m: int) -> int:
    return ((x + m - 1) // m) * m


def _vmem_limit_bytes() -> int:
    """Scoped-VMEM limit: ~75% of physical, capped at 96 MiB, 48 MiB fallback."""
    default = 48 << 20
    try:
        cap = pltpu.get_tpu_info().vmem_capacity_bytes
    except Exception:
        return default
    return int(min(cap - cap // 4, 96 << 20))


def _pairwise_dist_kernel(rows_ref, cols_ref, out_ref):
    # rows_ref: (BB, TI, 3)  -- row atoms i, coordinate on the lane axis
    # cols_ref: (BB, 3, TJ)  -- column atoms j, lane-dense in j
    # out_ref : (BB, TI, TJ)
    rows = rows_ref[...].astype(jnp.float32)
    cols = cols_ref[...].astype(jnp.float32)

    d2 = None
    for k in range(3):  # unrolled over x, y, z; k=0 seeds the accumulator
        diff = rows[:, :, k, None] - cols[:, k, None, :]   # (BB, TI, TJ)
        d2 = diff * diff if d2 is None else d2 + diff * diff
    out_ref[...] = jnp.sqrt(d2).astype(out_ref.dtype)


def pairwise_distances(positions):
    """positions: (B, N, 3) -> (B, N, N) pairwise Euclidean distances."""
    B, N, D = positions.shape
    assert D == 3, "PairwiseDistances expects 3-D coordinates"
    out_dtype = positions.dtype

    # --- tile sizes (sublane dim multiple of 8, lane dim multiple of 128) ----
    ti = min(256, _round_up(N, 8))      # rows i    -> sublane axis
    tj = min(1024, _round_up(N, 128))   # columns j -> lane axis
    num_i = pl.cdiv(N, ti)
    num_j = pl.cdiv(N, tj)

    # --- batch folding, budgeted against *physical* VMEM ---------------------
    # Double-buffered blocks, with their layout padding:
    #   rows  (bb, ti, 3)  -> lane-padded to 128 -> ti*128 f32
    #   cols  (bb, 3, tj)  -> sublane-padded to 8 ->  8*tj f32
    #   out   (bb, ti, tj)
    # plus ~3 live (bb, ti, tj) f32 temporaries inside the kernel body.
    itemsize = 4
    per_bb = 2 * itemsize * (ti * 128 + 8 * tj + ti * tj)
    per_bb += 3 * itemsize * ti * tj
    vmem_limit = _vmem_limit_bytes()
    budget = vmem_limit // 2            # leave headroom for compiler scratch
    cap = max(1, budget // per_bb)
    if num_i * num_j == 1 and B >= 2:
        # Keep >= 2 grid steps so both TensorCores on v7x get work.
        cap = min(cap, B // 2)
    bb = 1
    for d in range(1, B + 1):
        if B % d == 0 and d <= cap:
            bb = d

    # --- wrapper-side layouts (no output padding / post-slice) ---------------
    pos_rows = positions                      # (B, N, 3)
    pos_cols = jnp.swapaxes(positions, 1, 2)  # (B, 3, N): columns lane-dense

    grid = (B // bb, num_i, num_j)

    return pl.pallas_call(
        _pairwise_dist_kernel,
        out_shape=jax.ShapeDtypeStruct((B, N, N), out_dtype),
        grid=grid,
        in_specs=[
            pl.BlockSpec((bb, ti, 3), lambda b, i, j: (b, i, 0)),
            pl.BlockSpec((bb, 3, tj), lambda b, i, j: (b, 0, j)),
        ],
        out_specs=pl.BlockSpec((bb, ti, tj), lambda b, i, j: (b, i, j)),
        compiler_params=pltpu.CompilerParams(
            dimension_semantics=("parallel", "parallel", "parallel"),
            vmem_limit_bytes=vmem_limit,
        ),
    )(pos_rows, pos_cols)


if __name__ == "__main__":
    key = jax.random.PRNGKey(0)

    def ref_fn(pos):
        return jnp.linalg.norm(pos[:, :, None, :] - pos[:, None, :, :], axis=-1)

    # Case 1: small deterministic example (batch=2, 8 atoms, 3-D coordinates).
    B, N, Dd = 2, 8, 3
    k1, k2 = jax.random.split(key)
    positions = jax.random.normal(k1, (B, N, Dd), dtype=jnp.float32)
    r_ij = jax.block_until_ready(pairwise_distances(positions))
    assert r_ij.shape == (B, N, N)
    assert jnp.allclose(r_ij, ref_fn(positions), atol=1e-5, rtol=1e-5)

    # Case 2: unaligned N exercises the masked edge tiles (no padding/slice).
    B2, N2 = 2, 20
    positions2 = jax.random.normal(k2, (B2, N2, Dd), dtype=jnp.float32)
    r_ij2 = jax.block_until_ready(pairwise_distances(positions2))
    assert r_ij2.shape == (B2, N2, N2)
    assert jnp.allclose(r_ij2, ref_fn(positions2), atol=1e-5, rtol=1e-5)

    print("KERNEL_OK")
</pallas_src>

<mosaic_0001>
module attributes {stable_mosaic.version = 11 : i64} {
  func.func @_pairwise_dist_kernel(%arg0: i32, %arg1: i32, %arg2: i32, %arg3: memref<1x8x3xf32, #tpu.memory_space<vmem>>, %arg4: memref<1x3x128xf32, #tpu.memory_space<vmem>>, %arg5: memref<1x8x128xf32, #tpu.memory_space<vmem>>) attributes {dimension_semantics = [#tpu.dimension_semantics<parallel>, #tpu.dimension_semantics<parallel>, #tpu.dimension_semantics<parallel>], iteration_bounds = array<i64: 2, 1, 1>, scalar_prefetch = 0 : i64, scratch_operands = 0 : i64, tpu.core_type = #tpu.core_type<tc>, window_params = [{transform_indices = @transform_0, window_bounds = array<i64: 1, 8, 3>}, {transform_indices = @transform_1, window_bounds = array<i64: 1, 3, 128>}, {transform_indices = @transform_2, window_bounds = array<i64: 1, 8, 128>}]} {
    %c0 = arith.constant 0 : index
    %c0_0 = arith.constant 0 : index
    %c0_1 = arith.constant 0 : index
    %0 = vector.load %arg3[%c0, %c0_0, %c0_1] : memref<1x8x3xf32, #tpu.memory_space<vmem>>, vector<1x8x3xf32>
    %c0_2 = arith.constant 0 : index
    %c0_3 = arith.constant 0 : index
    %c0_4 = arith.constant 0 : index
    %1 = vector.load %arg4[%c0_2, %c0_3, %c0_4] : memref<1x3x128xf32, #tpu.memory_space<vmem>>, vector<1x3x128xf32>
    %2 = vector.extract_strided_slice %0 {offsets = [0, 0, 0], sizes = [1, 8, 1], strides = [1, 1, 1]} : vector<1x8x3xf32> to vector<1x8x1xf32>
    %3 = vector.shape_cast %2 : vector<1x8x1xf32> to vector<1x8xf32>
    %4 = vector.shape_cast %3 : vector<1x8xf32> to vector<1x8x1xf32>
    %5 = vector.extract_strided_slice %1 {offsets = [0, 0, 0], sizes = [1, 1, 128], strides = [1, 1, 1]} : vector<1x3x128xf32> to vector<1x1x128xf32>
    %6 = vector.shape_cast %5 : vector<1x1x128xf32> to vector<1x128xf32>
    %7 = vector.shape_cast %6 : vector<1x128xf32> to vector<1x1x128xf32>
    %8 = vector.broadcast %4 : vector<1x8x1xf32> to vector<1x8x128xf32>
    %9 = vector.broadcast %7 : vector<1x1x128xf32> to vector<1x8x128xf32>
    %10 = arith.subf %8, %9 : vector<1x8x128xf32>
    %11 = arith.mulf %10, %10 : vector<1x8x128xf32>
    %12 = vector.extract_strided_slice %0 {offsets = [0, 0, 1], sizes = [1, 8, 1], strides = [1, 1, 1]} : vector<1x8x3xf32> to vector<1x8x1xf32>
    %13 = vector.shape_cast %12 : vector<1x8x1xf32> to vector<1x8xf32>
    %14 = vector.shape_cast %13 : vector<1x8xf32> to vector<1x8x1xf32>
    %15 = vector.extract_strided_slice %1 {offsets = [0, 1, 0], sizes = [1, 1, 128], strides = [1, 1, 1]} : vector<1x3x128xf32> to vector<1x1x128xf32>
    %16 = vector.shape_cast %15 : vector<1x1x128xf32> to vector<1x128xf32>
    %17 = vector.shape_cast %16 : vector<1x128xf32> to vector<1x1x128xf32>
    %18 = vector.broadcast %14 : vector<1x8x1xf32> to vector<1x8x128xf32>
    %19 = vector.broadcast %17 : vector<1x1x128xf32> to vector<1x8x128xf32>
    %20 = arith.subf %18, %19 : vector<1x8x128xf32>
    %21 = arith.mulf %20, %20 : vector<1x8x128xf32>
    %22 = arith.addf %11, %21 : vector<1x8x128xf32>
    %23 = vector.extract_strided_slice %0 {offsets = [0, 0, 2], sizes = [1, 8, 1], strides = [1, 1, 1]} : vector<1x8x3xf32> to vector<1x8x1xf32>
    %24 = vector.shape_cast %23 : vector<1x8x1xf32> to vector<1x8xf32>
    %25 = vector.shape_cast %24 : vector<1x8xf32> to vector<1x8x1xf32>
    %26 = vector.extract_strided_slice %1 {offsets = [0, 2, 0], sizes = [1, 1, 128], strides = [1, 1, 1]} : vector<1x3x128xf32> to vector<1x1x128xf32>
    %27 = vector.shape_cast %26 : vector<1x1x128xf32> to vector<1x128xf32>
    %28 = vector.shape_cast %27 : vector<1x128xf32> to vector<1x1x128xf32>
    %29 = vector.broadcast %25 : vector<1x8x1xf32> to vector<1x8x128xf32>
    %30 = vector.broadcast %28 : vector<1x1x128xf32> to vector<1x8x128xf32>
    %31 = arith.subf %29, %30 : vector<1x8x128xf32>
    %32 = arith.mulf %31, %31 : vector<1x8x128xf32>
    %33 = arith.addf %22, %32 : vector<1x8x128xf32>
    %34 = math.sqrt %33 : vector<1x8x128xf32>
    %c0_5 = arith.constant 0 : index
    %c0_6 = arith.constant 0 : index
    %c0_7 = arith.constant 0 : index
    %35 = vector.load %arg5[%c0_5, %c0_6, %c0_7] : memref<1x8x128xf32, #tpu.memory_space<vmem>>, vector<1x8x128xf32>
    tpu.vector_store %arg5[%c0_5, %c0_6, %c0_7], %34 {strides = array<i32>} : memref<1x8x128xf32, #tpu.memory_space<vmem>>, vector<1x8x128xf32>,
    return
  }
  func.func @transform_0(%arg0: i32, %arg1: i32, %arg2: i32) -> (i32, i32, i32) {
    %c0_i32 = arith.constant 0 : i32
    %c0_i32_0 = arith.constant 0 : i32
    return %arg0, %arg1, %c0_i32 : i32, i32, i32
  }
  func.func @transform_1(%arg0: i32, %arg1: i32, %arg2: i32) -> (i32, i32, i32) {
    %c0_i32 = arith.constant 0 : i32
    %c0_i32_0 = arith.constant 0 : i32
    return %arg0, %c0_i32, %arg2 : i32, i32, i32
  }
  func.func @transform_2(%arg0: i32, %arg1: i32, %arg2: i32) -> (i32, i32, i32) {
    %c0_i32 = arith.constant 0 : i32
    return %arg0, %arg1, %arg2 : i32, i32, i32
  }
}

</mosaic_0001>

<bundles_post_ra>
// kernel: tpu_custom_call.1
= control target key start
LH: loop header
LB: loop body
LE: loop exit
PB: predicated region body
PF: predicated region fallthrough
CT: control target
= control target key end

     0   :  { %7 = vsyncpa [#allocation3], 0  ;;  %s640_s0 = inlined_call_operand.vmem [shape: f32[2,8,3], index: 0, kind: input, shape index: {}]   ;;  %s641_s1 = inlined_call_operand.vmem [shape: f32[2,3,8], index: 1, kind: input, shape index: {}]   ;;  %s642_s2 = inlined_call_operand.hbm [shape: f32[2,8,8], index: 2, kind: output, shape index: {}]  }
   0x1   :  { %9 = vsyncpa [#allocation3 + $0x1], 0  ;;  %s525_s9 = smov 0   ;;  %s527_s10 = smov 0  }
   0x2   :  { %s529_s11 = smov 0   ;;  %s531_s12 = smov 0  }
   0x3   :  { %s533_s13 = smov 0   ;;  %s535_s14 = smov 0  }
   0x4 LB: > { %s350_s15 = sadd.s32 4294967295, %s504_s14   ;;  %s351_s16 = sadd.s32 4294967294, %s504_s14   ;;  %s504_s14 = sphi %s535_s14, %s15_s14   ;;  %s500_s13 = sphi %s533_s13, %s649_s13   ;;  %s496_s12 = sphi %s531_s12, %s648_s12   ;;  %s492_s11 = sphi %s529_s11, %s647_s11   ;;  %s488_s10 = sphi %s527_s10, %s646_s10   ;;  %s484_s9 = sphi %s525_s9, %s645_s9  }
   0x5   : > { %s34_s17 = sadd.s32 1, %s500_s13  ;;  %s101_s18 = sadd.s32 1, %s492_s11 }
   0x6   : > { %p36_p0 = scmp.ge.s32.totalorder %s34_s17, 2  ;;  %p111_p1 = scmp.ne.s32.totalorder %s492_s11, %s488_s10 }
   0x7   : > { %p112_p2 = scmp.eq.s32.totalorder %s350_s15, 1  ;;  %p117_p3 = scmp.ne.s32.totalorder %s488_s10, %s484_s9 }
   0x8   : > { %s651_s17 = smov (%p36_p0, %s34_s17), 0  ;;  %p118_p5 = scmp.eq.s32.totalorder %s351_s16, 1 }
   0x9   : > { %p565_p4 = por %p112_p2, %p111_p1  ;;  %s94_s20 = ssub.s32 %s500_s13, %s651_s17 }
   0xa   : > { %p354_p6 = scmp.ge.s32.totalorder %s504_s14, 1  ;;  %p99_p7 = scmp.eq.s32.totalorder %s94_s20, 0 }
   0xb   : > { %p572_p8 = por %p118_p5, %p117_p3  ;;  %p156_p9 = scmp.lt.s32.totalorder %s504_s14, 3 }
   0xc   : > { %s578_s22 = scalar_select %p99_p7, %s492_s11, %s101_s18  }
   0xd   : > { %p157_p10 = pnand %p354_p6, %p156_p9 }
   0xe   : > { %p187_p11 = scmp.lt.s32.totalorder (!%p157_p10), %s496_s12, 1  ;;  %v506_v0 = vmov (!%p157_p10), 0   ;;  %v507_v1 = vmov (!%p157_p10), 2   ;;  %v508_v3 = vmov (!%p157_p10), 1   ;;  %v208_v4 = vlaneseq (!%p157_p10)  ;;  %s184_s4 = sand.u32 (!%p157_p10), 1, %s488_s10  }
   0xf   : > { %160 = sbr.rel (%p157_p10) target bundleno = 197 (0xc5), region = 28  ;;  %420 = vset.pattern.permute.xlu0 (!%p157_p10), %v506_v0  ;;  %422 = vset.pattern.permute.xlu1 (!%p157_p10), %v507_v1  ;;  %s355_s5 = sshll.u32 (!%p157_p10), %s184_s4, 3 }
  0x10   : > { %v209_v5 = vshrl.u32 (!%p157_p10), %v208_v4, 7  ;;  %s359_s6 = sshll.u32 (!%p157_p10), %s496_s12, 7  ;;  %s186_s7 = scalar_lea.vmem (!%p157_p10), [#allocation2], %s355_s5 }
  0x11   : > { %s260_s8 = sshll.u32 (!%p157_p10), %s186_s7, 4  ;;  %s593_s18 = scalar_lea.hbm (!%p157_p10), %s642_s2, %s359_s6  ;;  %s595_s8 = int_to_ptr.vmem [resolvable:$true] %s260_s8 }
  0x12   : > { %v210_v6 = vsub.s32 (!%p157_p10), 0, %v209_v5  ;;  %v231_v7 = vsub.s32 (!%p157_p10), 2, %v209_v5  ;;  %v220_v9 = vsub.s32 (!%p157_p10), 1, %v209_v5  ;;  %s426_s20 = scalar_lea.vmem (!%p157_p10), %s595_s8, 128 }
  0x13   : > { %p427_p12 = scmp.ne.s32.totalorder (!%p157_p10), %s595_s8, %s426_s20 }
  0x15   : > { %p428_p13 = pnand (!%p157_p10), %p427_p12, %p565_p4 }
  0x16   : > { %s188_s23 = scalar_select %p187_p11, %s496_s12, 1 }
  0x17   : > { %s245_s12 = scalar_lea.sflag [#allocation3], %s184_s4  ;;  %p429_p0 = pneg %p428_p13 }
  0x18   : > { %s356_s24 = sshll.u32 %s188_s23, 3  ;;  %s357_s28 = sshll.u32 %s188_s23, 2 }
  0x19   : > { %s193_s27 = scalar_lea.vmem %s640_s0, %s356_s24  ;;  %s200_s3 = scalar_lea.vmem %s641_s1, %s357_s28 }
  0x1a   : > { %v201_v2 = vld [vmem:[%s193_s27] sm:$0xff]  ;;  %s509_s23 = smov [#allocation2]  }
  0x1b   : > { %205 = vperm.xlu0 %420, %v201_v2   ;;  %226 = vperm.xlu1 %422, %v201_v2   ;;  %v202_v8 = vld [vmem:[%s200_s3] sm:$0x7]  ;;  %s430_s24 = sshll.u32 %s509_s23, 4  ;;  %s431_s24 = int_to_ptr.vmem [resolvable:$false] %s430_s24 }
  0x1c   : > { %v211_v10 = vrot.slane %v202_v8, %v210_v6  ;;  %v232_v12 = vrot.slane %v202_v8, %v231_v7  ;;  %v221_v14 = vrot.slane %v202_v8, %v220_v9  ;;  %s432_s25 = scalar_lea.vmem %s431_s24, 256  ;;  %p433_p1 = scmp.lt.s32.totalorder %s595_s8, %s431_s24 }
  0x1d   : > { %p434_p2 = scmp.lt.s32.totalorder %s432_s25, %s426_s20 }
  0x1f   : > { %421 = vset.pattern.permute.xlu0 %v508_v3  ;;  %p435_p3 = por %p434_p2, %p433_p1 }
  0x20   : > { %215 = vperm.xlu0 %421, %v201_v2  }
  0x21   : > { %p436_p5 = pnand %p435_p3, %p429_p0 }
  0x24   : > { %423 = vset.pattern.permute.xlu0 %v507_v1 }
  0x9a   : > { %v206_v11 = vpop.permute.xlu0 %205  ;;  %v227_v13 = vpop.permute.xlu1 %226 }
  0x9b   : > { %v212_v15 = vsub.f32 %v206_v11, %v211_v10  ;;  %v233_v16 = vsub.f32 %v227_v13, %v232_v12 }
  0x9d   : > { %v213_v19 = vmul.f32 %v212_v15, %v212_v15  ;;  %v234_v21 = vmul.f32 %v233_v16, %v233_v16 }
  0x9f   : > { %v216_v17 = vpop.permute.xlu0 %215 }
  0xa0   : > { %v222_v18 = vsub.f32 %v216_v17, %v221_v14 }
  0xa2   : > { %v223_v20 = vmul.f32 %v222_v18, %v222_v18 }
  0xa4   : > { %v224_v22 = vadd.f32 %v223_v20, %v213_v19 }
  0xa6   : > { %v235_v23 = vadd.f32 %v234_v21, %v224_v22 }
  0xa8   : > { %424 = vrsqrt.f32 %v235_v23  ;;  %vm238_vm0 = vcmp.eq.f32.partialorder %v235_v23, inf  ;;  %v241_v26 = vand.u32 2147483648, %v235_v23  ;;  %vm240_vm1 = vcmp.eq.f32.partialorder %v235_v23, 0.0 }
  0xb2   : > { %v425_v24 = vpop.eup %424 }
  0xb3   : > { %v237_v25 = vmul.f32 %v425_v24, %v235_v23 }
  0xb5   : > { %v239_v27 = vsel %vm238_vm0, %v235_v23, %v237_v25 }
  0xb6   : > { %v242_v28 = vsel %vm240_vm1, %v241_v26, %v239_v27 }
  0xb7   : > { %243 = vst [vmem:[%s186_s7] sm:$0xff] %v242_v28 }
  0xb8   : > { %439 = shalt.err (!%p436_p5)
}
  0xb9   : > { %s440_s26 = scalar_lea.hbm %s593_s18, 128  ;;  %s444_s29 = scalar_lea.hbm %s642_s2, 256 }
  0xba   : > { %p441_p6 = scmp.ne.s32.totalorder %s593_s18, %s440_s26  ;;  %p445_p10 = scmp.lt.u32.totalorder %s593_s18, %s642_s2 }
  0xbb   : > { %p446_p11 = scmp.lt.u32.totalorder %s444_s29, %s440_s26  ;;  %p448_p13 = scmp.lt.u32.totalorder %s440_s26, %s593_s18 }
  0xbc   : > { %p442_p7 = pnand %p441_p6, %p565_p4 }
  0xbd   : > { %p447_p12 = por %p446_p11, %p445_p10 }
  0xbe   : > { %p443_p9 = pneg %p442_p7 }
  0xbf   : > { %p449_p0 = por %p448_p13, %p447_p12 }
  0xc1   : > { %p450_p1 = pnand %p449_p0, %p443_p9 }
  0xc3   : > { %453 = shalt.err (!%p450_p1)
}
  0xc4   : > { %362 = dma.vmem_to_hbm [thread:$0]  (%p565_p4), %s595_s8, 128, %s593_s18, %s245_s12  }
  0xc5 PF: > { %p368_p2 = scmp.ge.s32.totalorder %s504_s14, 2  ;;  %s272_s4 = sand.u32 1, %s484_s9  }
  0xc6   : > { %s273_s5 = scalar_lea.sflag [#allocation3], %s272_s4 }
  0xc7   : > { %p365_p3 = pnand %p368_p2, %p572_p8 }
  0xc9   : > { %479 = dma.done.wait (!%p365_p3), %s273_s5, 128  }
  0xca   : > { %481 = vsyncadd (!%p365_p3), %s273_s5, 4294967168  ;;  %s15_s14 = sadd.s32 1, %s504_s14   ;;  %s645_s9 = smov %s488_s10 }
  0xcb   : > { %p12_p5 = scmp.ge.s32.totalorder %s15_s14, 4   ;;  %s646_s10 = smov %s492_s11 }
  0xcc   : > { %s647_s11 = smov %s578_s22  ;;  %s648_s12 = smov %s500_s13 }
  0xcd   : > { %s649_s13 = smov %s651_s17  ;;  %14 = sbr.rel (!%p12_p5) target bundleno = 4 (0x4), region = 66 }
  0xd4   :  { %278 = vsyncpa [#allocation3], 1 }
  0xd5   :  { %280 = vsyncpa [#allocation3 + $0x1], 1 }

</bundles_post_ra>
